<compile_context>
chip_gen: v5e
topology: v5e:2x2
jax: 0.10.0
libtpu: 0.0.40
codegen_flags: <defaults>
</compile_context>

<pallas_src>
import functools
from typing import Any, NamedTuple

import jax
import jax.numpy as jnp
from jax import lax
from jax.experimental import pallas as pl
from jax.experimental.pallas import tpu as pltpu


def _round_up(n, m):
    return (n + m - 1) // m * m


# -----------------------------------------------------------------------------
# Kernel
# -----------------------------------------------------------------------------
def _cidec_kernel(alpha, matmul_dtype,
                  x_ref, w_enc_ref, b_enc_ref, w_mu_ref, b_mu_ref,
                  w_dec_ref, b_dec_ref, w_out_ref, b_out_ref,
                  mu_ref, mu_sq_ref,
                  z_ref, q_ref, xrecon_ref):
    f32 = jnp.float32

    def mm(a, w_ref):
        # Cast the activation tile to the matmul dtype *inside* the kernel:
        # a cheap VPU op hidden under the MXU (no wrapper-side HBM pass).
        return jnp.dot(a.astype(matmul_dtype), w_ref[...],
                       preferred_element_type=f32)

    # ---- encoder: Linear + ReLU ----
    h = jnp.maximum(mm(x_ref[...], w_enc_ref) + b_enc_ref[...], 0.0)
    # ---- _enc_mu: Linear -> z (kept in f32 for the distance computation) ----
    z = mm(h, w_mu_ref) + b_mu_ref[...]
    # ---- decoder: Linear + ReLU ----
    hd = jnp.maximum(mm(z, w_dec_ref) + b_dec_ref[...], 0.0)
    # ---- _dec: Linear -> xrecon (lane-dense padded width) ----
    xr = mm(hd, w_out_ref) + b_out_ref[...]

    # ---- soft_assign ----
    # dist2[b,k] = ||z_b||^2 + ||mu_k||^2 - 2 z_b.mu_k ; trans-B dot_general
    # (contract last axes) avoids any mu transpose / relayout in the kernel.
    # The cross term stays f32: negligible FLOPs vs the encoder/decoder GEMMs
    # and the distance is cancellation-sensitive.
    cross = lax.dot_general(z, mu_ref[...],
                            dimension_numbers=(((1,), (1,)), ((), ())),
                            preferred_element_type=f32)            # (TB, KPAD)
    z_sq = jnp.sum(z * z, axis=1, keepdims=True)                   # (TB, 1)
    dist2 = jnp.maximum(z_sq + mu_sq_ref[...] - 2.0 * cross, 0.0)
    # Padded cluster columns carry mu_sq = 1e30 -> their q underflows to 0,
    # so no per-tile iota/compare/mask is needed.
    q = 1.0 / (1.0 + dist2 * (1.0 / alpha))
    if alpha == 1.0:
        q = q * q                    # exponent (alpha+1)=2: avoid exp/log pow
    else:
        q = q ** (alpha + 1.0)
    # torch computes q ** (alpha+1) / 2.0 (operator precedence) -- the /2.0
    # cancels under the row normalization below, so it is dropped.
    q = q * pl.reciprocal(jnp.sum(q, axis=1, keepdims=True), approx=True)

    z_ref[...] = z
    q_ref[...] = q
    xrecon_ref[...] = xr.astype(xrecon_ref.dtype)


# -----------------------------------------------------------------------------
# Parameter preparation (one-time; cache the result across forward calls)
# -----------------------------------------------------------------------------
class CIDECPreparedParams(NamedTuple):
    weights: tuple
    matmul_dtype: Any
    input_dim: int
    hidden_enc: int
    z_dim: int
    zpad: int
    hidden_dec: int
    n_clusters: int
    kpad: int
    opad: int


def prepare_params(params, *, matmul_dtype=jnp.bfloat16):
    """Pad / cast the CIDEC parameters once (avoids per-call HBM->HBM prep)."""
    f32 = jnp.float32
    input_dim, hidden_enc = params["w_enc"].shape
    z_dim = params["w_mu"].shape[1]
    hidden_dec = params["w_dec"].shape[1]
    n_clusters = params["mu"].shape[0]

    zpad = _round_up(z_dim, 128)        # lane-dense z block
    kpad = _round_up(n_clusters, 128)   # lane-dense q block
    opad = _round_up(input_dim, 128)    # lane-dense xrecon block

    w_enc = jnp.asarray(params["w_enc"], f32).astype(matmul_dtype)
    b_enc = jnp.asarray(params["b_enc"], f32).reshape(1, hidden_enc)
    w_mu = jnp.pad(jnp.asarray(params["w_mu"], f32),
                   ((0, 0), (0, zpad - z_dim))).astype(matmul_dtype)
    b_mu = jnp.pad(jnp.asarray(params["b_mu"], f32).reshape(1, z_dim),
                   ((0, 0), (0, zpad - z_dim)))
    w_dec = jnp.pad(jnp.asarray(params["w_dec"], f32),
                    ((0, zpad - z_dim), (0, 0))).astype(matmul_dtype)
    b_dec = jnp.asarray(params["b_dec"], f32).reshape(1, hidden_dec)
    w_out = jnp.pad(jnp.asarray(params["w_out"], f32),
                    ((0, 0), (0, opad - input_dim))).astype(matmul_dtype)
    b_out = jnp.pad(jnp.asarray(params["b_out"], f32).reshape(1, input_dim),
                    ((0, 0), (0, opad - input_dim)))
    mu = jnp.pad(jnp.asarray(params["mu"], f32),
                 ((0, kpad - n_clusters), (0, zpad - z_dim)))
    mu_sq = jnp.sum(mu * mu, axis=1).reshape(1, kpad)
    # Large sentinel on padded cluster columns -> q underflows to 0 in-kernel.
    mu_sq = jnp.where(jnp.arange(kpad).reshape(1, kpad) < n_clusters,
                      mu_sq, jnp.float32(1e30))

    weights = (w_enc, b_enc, w_mu, b_mu, w_dec, b_dec, w_out, b_out, mu, mu_sq)
    weights = jax.block_until_ready(weights)
    return CIDECPreparedParams(weights, matmul_dtype, int(input_dim),
                               int(hidden_enc), int(z_dim), int(zpad),
                               int(hidden_dec), int(n_clusters), int(kpad),
                               int(opad))


# -----------------------------------------------------------------------------
# Forward wrapper
# -----------------------------------------------------------------------------
def cidec_forward(x, params, alpha=1.0, *, tile_b=512,
                  matmul_dtype=jnp.bfloat16, xrecon_dtype=jnp.float32):
    """Fused CIDEC forward. Returns (z, q, xrecon) matching the torch module."""
    if not isinstance(params, CIDECPreparedParams):
        params = prepare_params(params, matmul_dtype=matmul_dtype)
    p = params
    f32 = jnp.float32

    B, input_dim = x.shape
    assert input_dim == p.input_dim, "x feature dim does not match params"
    x = x.astype(f32)     # x stays f32 in HBM; per-tile cast happens in-kernel

    weights = p.weights
    weight_bytes = sum(int(w.size) * w.dtype.itemsize for w in weights)
    mm_itemsize = jnp.dtype(p.matmul_dtype).itemsize
    out_itemsize = jnp.dtype(xrecon_dtype).itemsize

    try:
        vmem_cap = int(pltpu.get_tpu_info().vmem_capacity_bytes)
    except Exception:
        vmem_cap = 64 << 20            # v7x worst case; v5e/v6e have 128 MiB

    # ---- honest per-tile VMEM model ----------------------------------------
    def _needed(tb):
        x_tile = 2 * tb * input_dim * 4                       # dbl-buffered in
        out_tile = 2 * tb * (p.zpad * 4 + p.kpad * 4 + p.opad * out_itemsize)
        # in-kernel intermediates (h, hd, z, cross/q, xr) plus their
        # matmul-dtype copies / compiler temporaries (x2 slack).
        interm = 2 * tb * (p.hidden_enc + p.hidden_dec
                           + p.zpad + p.kpad + p.opad) * 4
        return weight_bytes + x_tile + out_tile + interm + (4 << 20)

    budget = int(0.75 * vmem_cap)

    # ---- batch tile sizing --------------------------------------------------
    row_gran = 8                                 # f32 sublane granularity
    pack_gran = 16 if (mm_itemsize == 2 or out_itemsize == 2) else 8
    if B < row_gran:
        tile_b = B                               # single full-extent block
    else:
        tb = min(_round_up(int(tile_b), pack_gran), _round_up(B, row_gran))
        tb = max(row_gran, tb - tb % row_gran)
        while tb > row_gran and _needed(tb) > budget:
            tb = max(row_gran, _round_up(tb // 2, row_gran))
        # keep >=2 grid steps when the batch allows it so CORE_PARALLEL can
        # split the grid across v7x's two TensorCores.
        while tb > pack_gran and pl.cdiv(B, tb) < 2:
            tb = max(pack_gran, _round_up(tb // 2, pack_gran))
        tile_b = tb

    # A bf16 output block needs 16-row tiles (unless it is the full extent).
    if out_itemsize == 2 and tile_b % 16 != 0 and tile_b != B:
        xrecon_dtype = f32
        out_itemsize = 4

    grid = (pl.cdiv(B, tile_b),)

    out_shapes = (
        jax.ShapeDtypeStruct((B, p.zpad), f32),
        jax.ShapeDtypeStruct((B, p.kpad), f32),
        jax.ShapeDtypeStruct((B, p.opad), xrecon_dtype),
    )

    flops = 2 * B * (input_dim * p.hidden_enc + p.hidden_enc * p.zpad
                     + p.zpad * p.hidden_dec + p.hidden_dec * p.opad
                     + p.zpad * p.kpad)
    cost = pl.CostEstimate(
        flops=int(flops),
        transcendentals=0 if float(alpha) == 1.0 else int(B * p.kpad),
        bytes_accessed=int(B * input_dim * 4
                           + B * (p.zpad * 4 + p.kpad * 4
                                  + p.opad * out_itemsize)
                           + weight_bytes),
    )
    # Leave headroom below the physical cap (important on v7x's 64 MiB).
    vmem_limit = int(min(vmem_cap - (8 << 20),
                         max(_needed(tile_b), 32 << 20)))

    kernel = functools.partial(_cidec_kernel, float(alpha), p.matmul_dtype)

    def _call(dim_sem, weight_pipeline_mode):
        if weight_pipeline_mode is None:
            def _resident(arr):
                return pl.BlockSpec(arr.shape, lambda i: (0, 0))
        else:
            def _resident(arr):
                return pl.BlockSpec(arr.shape, lambda i: (0, 0),
                                    pipeline_mode=weight_pipeline_mode)
        in_specs = [pl.BlockSpec((tile_b, input_dim), lambda i: (i, 0))]
        in_specs += [_resident(w) for w in weights]
        out_specs = (
            pl.BlockSpec((tile_b, p.zpad), lambda i: (i, 0)),
            pl.BlockSpec((tile_b, p.kpad), lambda i: (i, 0)),
            pl.BlockSpec((tile_b, p.opad), lambda i: (i, 0)),
        )
        return pl.pallas_call(
            kernel,
            grid=grid,
            in_specs=in_specs,
            out_specs=out_specs,
            out_shape=out_shapes,
            compiler_params=pltpu.CompilerParams(
                dimension_semantics=(dim_sem,),
                vmem_limit_bytes=vmem_limit,
            ),
            cost_estimate=cost,
        )(x, *weights)

    try:
        # Optimized config: CORE_PARALLEL really shards the batch grid across
        # v7x's two TensorCores; Buffered(1) single-buffers the grid-invariant
        # weights (their block index never changes).
        z_p, q_p, xr_p = _call(pltpu.CORE_PARALLEL, pl.Buffered(1))
    except Exception:
        # Conservative fallback (previous known-good configuration).
        z_p, q_p, xr_p = _call("parallel", None)

    return (z_p[:, :p.z_dim], q_p[:, :p.n_clusters], xr_p[:, :input_dim])


# -----------------------------------------------------------------------------
# Reference / test helpers
# -----------------------------------------------------------------------------
def init_params(key, input_dim, hidden_enc, z_dim, hidden_dec, n_clusters):
    """Deterministic synthetic parameters (uniform +-1/sqrt(fan_in))."""
    ks = jax.random.split(key, 9)

    def lin(k, fan_in, fan_out):
        bound = 1.0 / jnp.sqrt(fan_in)
        kw, kb = jax.random.split(k)
        w = jax.random.uniform(kw, (fan_in, fan_out), jnp.float32, -bound, bound)
        b = jax.random.uniform(kb, (1, fan_out), jnp.float32, -bound, bound)
        return w, b

    w_enc, b_enc = lin(ks[0], input_dim, hidden_enc)
    w_mu, b_mu = lin(ks[1], hidden_enc, z_dim)
    w_dec, b_dec = lin(ks[2], z_dim, hidden_dec)
    w_out, b_out = lin(ks[3], hidden_dec, input_dim)
    mu = jax.random.normal(ks[4], (n_clusters, z_dim), jnp.float32)

    return dict(w_enc=w_enc, b_enc=b_enc, w_mu=w_mu, b_mu=b_mu,
                w_dec=w_dec, b_dec=b_dec, w_out=w_out, b_out=b_out, mu=mu)


def cidec_forward_ref(x, params, alpha=1.0):
    """Pure-JAX reference mirroring the PyTorch forward()."""
    h = jnp.maximum(x @ params["w_enc"] + params["b_enc"], 0.0)
    z = h @ params["w_mu"] + params["b_mu"]
    hd = jnp.maximum(z @ params["w_dec"] + params["b_dec"], 0.0)
    xr = hd @ params["w_out"] + params["b_out"]
    diff = z[:, None, :] - params["mu"][None, :, :]
    q = 1.0 / (1.0 + jnp.sum(diff * diff, axis=2) / alpha)
    q = (q ** (alpha + 1.0)) / 2.0
    q = q / jnp.sum(q, axis=1, keepdims=True)
    return z, q, xr


if __name__ == "__main__":
    # TODO(synk): only forward() / soft_assign are kernelized; the training
    # loop, kmeans init and loss utilities of the torch module are host-side.
    B, input_dim, hidden, z_dim, n_clusters = 8, 32, 32, 8, 8
    alpha = 1.0

    key = jax.random.PRNGKey(0)
    k_params, k_x, k_x2 = jax.random.split(key, 3)
    params = init_params(k_params, input_dim, hidden, z_dim, hidden, n_clusters)
    x = jax.random.normal(k_x, (B, input_dim), jnp.float32)
    z_r, q_r, xr_r = cidec_forward_ref(x, params, alpha=alpha)

    # --- f32 MXU path (tight tolerance; q uses the approx EUP reciprocal) ---
    prepared_f32 = prepare_params(params, matmul_dtype=jnp.float32)
    z, q, xrecon = cidec_forward(x, prepared_f32, alpha=alpha)
    jax.block_until_ready((z, q, xrecon))
    assert z.shape == (B, z_dim) and q.shape == (B, n_clusters)
    assert xrecon.shape == (B, input_dim)
    assert jnp.allclose(z, z_r, atol=1e-4, rtol=1e-4)
    assert jnp.allclose(q, q_r, atol=2e-3, rtol=2e-3)
    assert jnp.allclose(xrecon, xr_r, atol=1e-4, rtol=1e-4)

    # --- default bf16 MXU path (f32 accumulation), params prepared once ---
    prepared_bf16 = prepare_params(params)            # matmul_dtype = bf16
    z_b, q_b, xr_b = cidec_forward(x, prepared_bf16, alpha=alpha)
    jax.block_until_ready((z_b, q_b, xr_b))
    assert jnp.allclose(z_b, z_r, atol=5e-2, rtol=5e-2)
    assert jnp.allclose(q_b, q_r, atol=5e-2, rtol=5e-2)
    assert jnp.allclose(xr_b, xr_r, atol=5e-2, rtol=5e-2)

    # --- multi-tile grid with a ragged batch (B=50, tile_b=16 -> 4 steps,
    #     partial last block, no x padding) and bf16 xrecon writeback ---
    B2 = 50
    x2 = jax.random.normal(k_x2, (B2, input_dim), jnp.float32)
    z2_r, q2_r, xr2_r = cidec_forward_ref(x2, params, alpha=alpha)
    z2, q2, xr2 = cidec_forward(x2, prepared_bf16, alpha=alpha, tile_b=16,
                                xrecon_dtype=jnp.bfloat16)
    jax.block_until_ready((z2, q2, xr2))
    assert z2.shape == (B2, z_dim) and q2.shape == (B2, n_clusters)
    assert xr2.shape == (B2, input_dim)
    assert jnp.allclose(z2, z2_r, atol=5e-2, rtol=5e-2)
    assert jnp.allclose(q2, q2_r, atol=5e-2, rtol=5e-2)
    assert jnp.allclose(xr2.astype(jnp.float32), xr2_r, atol=1e-1, rtol=1e-1)

    print("KERNEL_OK")
</pallas_src>

<mosaic_0001>
module attributes {stable_mosaic.version = 11 : i64} {
  func.func @_cidec_kernel(%arg0: i32, %arg1: memref<8x32xf32, #tpu.memory_space<vmem>>, %arg2: memref<32x32xf32, #tpu.memory_space<vmem>>, %arg3: memref<1x32xf32, #tpu.memory_space<vmem>>, %arg4: memref<32x128xf32, #tpu.memory_space<vmem>>, %arg5: memref<1x128xf32, #tpu.memory_space<vmem>>, %arg6: memref<128x32xf32, #tpu.memory_space<vmem>>, %arg7: memref<1x32xf32, #tpu.memory_space<vmem>>, %arg8: memref<32x128xf32, #tpu.memory_space<vmem>>, %arg9: memref<1x128xf32, #tpu.memory_space<vmem>>, %arg10: memref<128x128xf32, #tpu.memory_space<vmem>>, %arg11: memref<1x128xf32, #tpu.memory_space<vmem>>, %arg12: memref<8x128xf32, #tpu.memory_space<vmem>>, %arg13: memref<8x128xf32, #tpu.memory_space<vmem>>, %arg14: memref<8x128xf32, #tpu.memory_space<vmem>>) attributes {dimension_semantics = [#tpu.dimension_semantics<core_parallel>], iteration_bounds = array<i64: 1>, scalar_prefetch = 0 : i64, scratch_operands = 0 : i64, tpu.core_type = #tpu.core_type<tc>, window_params = [{transform_indices = @transform_0, window_bounds = array<i64: 8, 32>}, {pipeline_mode = #tpu.pipeline_mode<synchronous>, transform_indices = @transform_1, window_bounds = array<i64: 32, 32>}, {pipeline_mode = #tpu.pipeline_mode<synchronous>, transform_indices = @transform_2, window_bounds = array<i64: 1, 32>}, {pipeline_mode = #tpu.pipeline_mode<synchronous>, transform_indices = @transform_3, window_bounds = array<i64: 32, 128>}, {pipeline_mode = #tpu.pipeline_mode<synchronous>, transform_indices = @transform_4, window_bounds = array<i64: 1, 128>}, {pipeline_mode = #tpu.pipeline_mode<synchronous>, transform_indices = @transform_5, window_bounds = array<i64: 128, 32>}, {pipeline_mode = #tpu.pipeline_mode<synchronous>, transform_indices = @transform_6, window_bounds = array<i64: 1, 32>}, {pipeline_mode = #tpu.pipeline_mode<synchronous>, transform_indices = @transform_7, window_bounds = array<i64: 32, 128>}, {pipeline_mode = #tpu.pipeline_mode<synchronous>, transform_indices = @transform_8, window_bounds = array<i64: 1, 128>}, {pipeline_mode = #tpu.pipeline_mode<synchronous>, transform_indices = @transform_9, window_bounds = array<i64: 128, 128>}, {pipeline_mode = #tpu.pipeline_mode<synchronous>, transform_indices = @transform_10, window_bounds = array<i64: 1, 128>}, {transform_indices = @transform_11, window_bounds = array<i64: 8, 128>}, {transform_indices = @transform_12, window_bounds = array<i64: 8, 128>}, {transform_indices = @transform_13, window_bounds = array<i64: 8, 128>}]} {
    %c0 = arith.constant 0 : index
    %c0_0 = arith.constant 0 : index
    %0 = vector.load %arg1[%c0, %c0_0] : memref<8x32xf32, #tpu.memory_space<vmem>>, vector<8x32xf32>
    %c0_1 = arith.constant 0 : index
    %c0_2 = arith.constant 0 : index
    %1 = vector.load %arg2[%c0_1, %c0_2] : memref<32x32xf32, #tpu.memory_space<vmem>>, vector<32x32xf32>
    %cst = arith.constant dense<0.000000e+00> : vector<8x32xf32>
    %2 = tpu.matmul %0, %1, %cst {dimension_numbers = #tpu.dot_dimension_numbers<[1], [0], [0], [1], [0, 0, 1, 1], [], []>} : vector<8x32xf32>, vector<32x32xf32>, vector<8x32xf32> -> vector<8x32xf32>
    %c0_3 = arith.constant 0 : index
    %c0_4 = arith.constant 0 : index
    %3 = vector.load %arg3[%c0_3, %c0_4] : memref<1x32xf32, #tpu.memory_space<vmem>>, vector<1x32xf32>
    %4 = vector.broadcast %3 : vector<1x32xf32> to vector<8x32xf32>
    %5 = arith.addf %2, %4 : vector<8x32xf32>
    %cst_5 = arith.constant 0.000000e+00 : f32
    %6 = vector.broadcast %cst_5 : f32 to vector<8x32xf32>
    %7 = arith.maximumf %5, %6 : vector<8x32xf32>
    %c0_6 = arith.constant 0 : index
    %c0_7 = arith.constant 0 : index
    %8 = vector.load %arg4[%c0_6, %c0_7] : memref<32x128xf32, #tpu.memory_space<vmem>>, vector<32x128xf32>
    %cst_8 = arith.constant dense<0.000000e+00> : vector<8x128xf32>
    %9 = tpu.matmul %7, %8, %cst_8 {dimension_numbers = #tpu.dot_dimension_numbers<[1], [0], [0], [1], [0, 0, 1, 1], [], []>} : vector<8x32xf32>, vector<32x128xf32>, vector<8x128xf32> -> vector<8x128xf32>
    %c0_9 = arith.constant 0 : index
    %c0_10 = arith.constant 0 : index
    %10 = vector.load %arg5[%c0_9, %c0_10] : memref<1x128xf32, #tpu.memory_space<vmem>>, vector<1x128xf32>
    %11 = vector.broadcast %10 : vector<1x128xf32> to vector<8x128xf32>
    %12 = arith.addf %9, %11 : vector<8x128xf32>
    %c0_11 = arith.constant 0 : index
    %c0_12 = arith.constant 0 : index
    %13 = vector.load %arg6[%c0_11, %c0_12] : memref<128x32xf32, #tpu.memory_space<vmem>>, vector<128x32xf32>
    %cst_13 = arith.constant dense<0.000000e+00> : vector<8x32xf32>
    %14 = tpu.matmul %12, %13, %cst_13 {dimension_numbers = #tpu.dot_dimension_numbers<[1], [0], [0], [1], [0, 0, 1, 1], [], []>} : vector<8x128xf32>, vector<128x32xf32>, vector<8x32xf32> -> vector<8x32xf32>
    %c0_14 = arith.constant 0 : index
    %c0_15 = arith.constant 0 : index
    %15 = vector.load %arg7[%c0_14, %c0_15] : memref<1x32xf32, #tpu.memory_space<vmem>>, vector<1x32xf32>
    %16 = vector.broadcast %15 : vector<1x32xf32> to vector<8x32xf32>
    %17 = arith.addf %14, %16 : vector<8x32xf32>
    %cst_16 = arith.constant 0.000000e+00 : f32
    %18 = vector.broadcast %cst_16 : f32 to vector<8x32xf32>
    %19 = arith.maximumf %17, %18 : vector<8x32xf32>
    %c0_17 = arith.constant 0 : index
    %c0_18 = arith.constant 0 : index
    %20 = vector.load %arg8[%c0_17, %c0_18] : memref<32x128xf32, #tpu.memory_space<vmem>>, vector<32x128xf32>
    %cst_19 = arith.constant dense<0.000000e+00> : vector<8x128xf32>
    %21 = tpu.matmul %19, %20, %cst_19 {dimension_numbers = #tpu.dot_dimension_numbers<[1], [0], [0], [1], [0, 0, 1, 1], [], []>} : vector<8x32xf32>, vector<32x128xf32>, vector<8x128xf32> -> vector<8x128xf32>
    %c0_20 = arith.constant 0 : index
    %c0_21 = arith.constant 0 : index
    %22 = vector.load %arg9[%c0_20, %c0_21] : memref<1x128xf32, #tpu.memory_space<vmem>>, vector<1x128xf32>
    %23 = vector.broadcast %22 : vector<1x128xf32> to vector<8x128xf32>
    %24 = arith.addf %21, %23 : vector<8x128xf32>
    %c0_22 = arith.constant 0 : index
    %c0_23 = arith.constant 0 : index
    %25 = vector.load %arg10[%c0_22, %c0_23] : memref<128x128xf32, #tpu.memory_space<vmem>>, vector<128x128xf32>
    %cst_24 = arith.constant dense<0.000000e+00> : vector<8x128xf32>
    %26 = tpu.matmul %12, %25, %cst_24 {dimension_numbers = #tpu.dot_dimension_numbers<[1], [1], [0], [0], [0, 0, 1, 0], [], []>} : vector<8x128xf32>, vector<128x128xf32>, vector<8x128xf32> -> vector<8x128xf32>
    %27 = arith.mulf %12, %12 : vector<8x128xf32>
    %cst_25 = arith.constant dense<0.000000e+00> : vector<8xf32>
    %28 = vector.multi_reduction <add>, %27, %cst_25 [1] : vector<8x128xf32> to vector<8xf32>
    %29 = vector.shape_cast %28 : vector<8xf32> to vector<8x1xf32>
    %c0_26 = arith.constant 0 : index
    %c0_27 = arith.constant 0 : index
    %30 = vector.load %arg11[%c0_26, %c0_27] : memref<1x128xf32, #tpu.memory_space<vmem>>, vector<1x128xf32>
    %31 = vector.broadcast %29 : vector<8x1xf32> to vector<8x128xf32>
    %32 = vector.broadcast %30 : vector<1x128xf32> to vector<8x128xf32>
    %33 = arith.addf %31, %32 : vector<8x128xf32>
    %cst_28 = arith.constant 2.000000e+00 : f32
    %34 = vector.broadcast %cst_28 : f32 to vector<8x128xf32>
    %35 = arith.mulf %34, %26 : vector<8x128xf32>
    %36 = arith.subf %33, %35 : vector<8x128xf32>
    %cst_29 = arith.constant 0.000000e+00 : f32
    %37 = vector.broadcast %cst_29 : f32 to vector<8x128xf32>
    %38 = arith.maximumf %36, %37 : vector<8x128xf32>
    %cst_30 = arith.constant 1.000000e+00 : f32
    %39 = vector.broadcast %cst_30 : f32 to vector<8x128xf32>
    %40 = arith.mulf %38, %39 : vector<8x128xf32>
    %cst_31 = arith.constant 1.000000e+00 : f32
    %41 = vector.broadcast %cst_31 : f32 to vector<8x128xf32>
    %42 = arith.addf %41, %40 : vector<8x128xf32>
    %cst_32 = arith.constant 1.000000e+00 : f32
    %43 = vector.broadcast %cst_32 : f32 to vector<8x128xf32>
    %44 = arith.divf %43, %42 : vector<8x128xf32>
    %45 = arith.mulf %44, %44 : vector<8x128xf32>
    %cst_33 = arith.constant dense<0.000000e+00> : vector<8xf32>
    %46 = vector.multi_reduction <add>, %45, %cst_33 [1] : vector<8x128xf32> to vector<8xf32>
    %47 = vector.shape_cast %46 : vector<8xf32> to vector<8x1xf32>
    %48 = tpu.reciprocal %47 {approx = true} : vector<8x1xf32> -> vector<8x1xf32>
    %49 = vector.broadcast %48 : vector<8x1xf32> to vector<8x128xf32>
    %50 = arith.mulf %45, %49 : vector<8x128xf32>
    %c0_34 = arith.constant 0 : index
    %c0_35 = arith.constant 0 : index
    %51 = vector.load %arg12[%c0_34, %c0_35] : memref<8x128xf32, #tpu.memory_space<vmem>>, vector<8x128xf32>
    tpu.vector_store %arg12[%c0_34, %c0_35], %12 {strides = array<i32>} : memref<8x128xf32, #tpu.memory_space<vmem>>, vector<8x128xf32>,
    %c0_36 = arith.constant 0 : index
    %c0_37 = arith.constant 0 : index
    %52 = vector.load %arg13[%c0_36, %c0_37] : memref<8x128xf32, #tpu.memory_space<vmem>>, vector<8x128xf32>
    tpu.vector_store %arg13[%c0_36, %c0_37], %50 {strides = array<i32>} : memref<8x128xf32, #tpu.memory_space<vmem>>, vector<8x128xf32>,
    %c0_38 = arith.constant 0 : index
    %c0_39 = arith.constant 0 : index
    %53 = vector.load %arg14[%c0_38, %c0_39] : memref<8x128xf32, #tpu.memory_space<vmem>>, vector<8x128xf32>
    tpu.vector_store %arg14[%c0_38, %c0_39], %24 {strides = array<i32>} : memref<8x128xf32, #tpu.memory_space<vmem>>, vector<8x128xf32>,
    return
  }
  func.func @transform_0(%arg0: i32) -> (i32, i32) {
    %c0_i32 = arith.constant 0 : i32
    %c0_i32_0 = arith.constant 0 : i32
    return %arg0, %c0_i32 : i32, i32
  }
  func.func @transform_1(%arg0: i32) -> (i32, i32) {
    %c0_i32 = arith.constant 0 : i32
    %c0_i32_0 = arith.constant 0 : i32
    %c0_i32_1 = arith.constant 0 : i32
    return %c0_i32, %c0_i32_0 : i32, i32
  }
  func.func @transform_2(%arg0: i32) -> (i32, i32) {
    %c0_i32 = arith.constant 0 : i32
    %c0_i32_0 = arith.constant 0 : i32
    %c0_i32_1 = arith.constant 0 : i32
    return %c0_i32, %c0_i32_0 : i32, i32
  }
  func.func @transform_3(%arg0: i32) -> (i32, i32) {
    %c0_i32 = arith.constant 0 : i32
    %c0_i32_0 = arith.constant 0 : i32
    %c0_i32_1 = arith.constant 0 : i32
    return %c0_i32, %c0_i32_0 : i32, i32
  }
  func.func @transform_4(%arg0: i32) -> (i32, i32) {
    %c0_i32 = arith.constant 0 : i32
    %c0_i32_0 = arith.constant 0 : i32
    %c0_i32_1 = arith.constant 0 : i32
    return %c0_i32, %c0_i32_0 : i32, i32
  }
  func.func @transform_5(%arg0: i32) -> (i32, i32) {
    %c0_i32 = arith.constant 0 : i32
    %c0_i32_0 = arith.constant 0 : i32
    %c0_i32_1 = arith.constant 0 : i32
    return %c0_i32, %c0_i32_0 : i32, i32
  }
  func.func @transform_6(%arg0: i32) -> (i32, i32) {
    %c0_i32 = arith.constant 0 : i32
    %c0_i32_0 = arith.constant 0 : i32
    %c0_i32_1 = arith.constant 0 : i32
    return %c0_i32, %c0_i32_0 : i32, i32
  }
  func.func @transform_7(%arg0: i32) -> (i32, i32) {
    %c0_i32 = arith.constant 0 : i32
    %c0_i32_0 = arith.constant 0 : i32
    %c0_i32_1 = arith.constant 0 : i32
    return %c0_i32, %c0_i32_0 : i32, i32
  }
  func.func @transform_8(%arg0: i32) -> (i32, i32) {
    %c0_i32 = arith.constant 0 : i32
    %c0_i32_0 = arith.constant 0 : i32
    %c0_i32_1 = arith.constant 0 : i32
    return %c0_i32, %c0_i32_0 : i32, i32
  }
  func.func @transform_9(%arg0: i32) -> (i32, i32) {
    %c0_i32 = arith.constant 0 : i32
    %c0_i32_0 = arith.constant 0 : i32
    %c0_i32_1 = arith.constant 0 : i32
    return %c0_i32, %c0_i32_0 : i32, i32
  }
  func.func @transform_10(%arg0: i32) -> (i32, i32) {
    %c0_i32 = arith.constant 0 : i32
    %c0_i32_0 = arith.constant 0 : i32
    %c0_i32_1 = arith.constant 0 : i32
    return %c0_i32, %c0_i32_0 : i32, i32
  }
  func.func @transform_11(%arg0: i32) -> (i32, i32) {
    %c0_i32 = arith.constant 0 : i32
    %c0_i32_0 = arith.constant 0 : i32
    return %arg0, %c0_i32 : i32, i32
  }
  func.func @transform_12(%arg0: i32) -> (i32, i32) {
    %c0_i32 = arith.constant 0 : i32
    %c0_i32_0 = arith.constant 0 : i32
    return %arg0, %c0_i32 : i32, i32
  }
  func.func @transform_13(%arg0: i32) -> (i32, i32) {
    %c0_i32 = arith.constant 0 : i32
    %c0_i32_0 = arith.constant 0 : i32
    return %arg0, %c0_i32 : i32, i32
  }
}

module attributes {stable_mosaic.version = 11 : i64} {
  func.func @_cidec_kernel(%arg0: i32, %arg1: memref<8x32xf32, #tpu.memory_space<vmem>>, %arg2: memref<32x32xf32, #tpu.memory_space<vmem>>, %arg3: memref<1x32xf32, #tpu.memory_space<vmem>>, %arg4: memref<32x128xf32, #tpu.memory_space<vmem>>, %arg5: memref<1x128xf32, #tpu.memory_space<vmem>>, %arg6: memref<128x32xf32, #tpu.memory_space<vmem>>, %arg7: memref<1x32xf32, #tpu.memory_space<vmem>>, %arg8: memref<32x128xf32, #tpu.memory_space<vmem>>, %arg9: memref<1x128xf32, #tpu.memory_space<vmem>>, %arg10: memref<128x128xf32, #tpu.memory_space<vmem>>, %arg11: memref<1x128xf32, #tpu.memory_space<vmem>>, %arg12: memref<8x128xf32, #tpu.memory_space<vmem>>, %arg13: memref<8x128xf32, #tpu.memory_space<vmem>>, %arg14: memref<8x128xf32, #tpu.memory_space<vmem>>) attributes {dimension_semantics = [#tpu.dimension_semantics<parallel>], iteration_bounds = array<i64: 1>, scalar_prefetch = 0 : i64, scratch_operands = 0 : i64, tpu.core_type = #tpu.core_type<tc>, window_params = [{transform_indices = @transform_0, window_bounds = array<i64: 8, 32>}, {pipeline_mode = #tpu.pipeline_mode<synchronous>, transform_indices = @transform_1, window_bounds = array<i64: 32, 32>}, {pipeline_mode = #tpu.pipeline_mode<synchronous>, transform_indices = @transform_2, window_bounds = array<i64: 1, 32>}, {pipeline_mode = #tpu.pipeline_mode<synchronous>, transform_indices = @transform_3, window_bounds = array<i64: 32, 128>}, {pipeline_mode = #tpu.pipeline_mode<synchronous>, transform_indices = @transform_4, window_bounds = array<i64: 1, 128>}, {pipeline_mode = #tpu.pipeline_mode<synchronous>, transform_indices = @transform_5, window_bounds = array<i64: 128, 32>}, {pipeline_mode = #tpu.pipeline_mode<synchronous>, transform_indices = @transform_6, window_bounds = array<i64: 1, 32>}, {pipeline_mode = #tpu.pipeline_mode<synchronous>, transform_indices = @transform_7, window_bounds = array<i64: 32, 128>}, {pipeline_mode = #tpu.pipeline_mode<synchronous>, transform_indices = @transform_8, window_bounds = array<i64: 1, 128>}, {pipeline_mode = #tpu.pipeline_mode<synchronous>, transform_indices = @transform_9, window_bounds = array<i64: 128, 128>}, {pipeline_mode = #tpu.pipeline_mode<synchronous>, transform_indices = @transform_10, window_bounds = array<i64: 1, 128>}, {transform_indices = @transform_11, window_bounds = array<i64: 8, 128>}, {transform_indices = @transform_12, window_bounds = array<i64: 8, 128>}, {transform_indices = @transform_13, window_bounds = array<i64: 8, 128>}]} {
    %c0 = arith.constant 0 : index
    %c0_0 = arith.constant 0 : index
    %0 = vector.load %arg1[%c0, %c0_0] : memref<8x32xf32, #tpu.memory_space<vmem>>, vector<8x32xf32>
    %c0_1 = arith.constant 0 : index
    %c0_2 = arith.constant 0 : index
    %1 = vector.load %arg2[%c0_1, %c0_2] : memref<32x32xf32, #tpu.memory_space<vmem>>, vector<32x32xf32>
    %cst = arith.constant dense<0.000000e+00> : vector<8x32xf32>
    %2 = tpu.matmul %0, %1, %cst {dimension_numbers = #tpu.dot_dimension_numbers<[1], [0], [0], [1], [0, 0, 1, 1], [], []>} : vector<8x32xf32>, vector<32x32xf32>, vector<8x32xf32> -> vector<8x32xf32>
    %c0_3 = arith.constant 0 : index
    %c0_4 = arith.constant 0 : index
    %3 = vector.load %arg3[%c0_3, %c0_4] : memref<1x32xf32, #tpu.memory_space<vmem>>, vector<1x32xf32>
    %4 = vector.broadcast %3 : vector<1x32xf32> to vector<8x32xf32>
    %5 = arith.addf %2, %4 : vector<8x32xf32>
    %cst_5 = arith.constant 0.000000e+00 : f32
    %6 = vector.broadcast %cst_5 : f32 to vector<8x32xf32>
    %7 = arith.maximumf %5, %6 : vector<8x32xf32>
    %c0_6 = arith.constant 0 : index
    %c0_7 = arith.constant 0 : index
    %8 = vector.load %arg4[%c0_6, %c0_7] : memref<32x128xf32, #tpu.memory_space<vmem>>, vector<32x128xf32>
    %cst_8 = arith.constant dense<0.000000e+00> : vector<8x128xf32>
    %9 = tpu.matmul %7, %8, %cst_8 {dimension_numbers = #tpu.dot_dimension_numbers<[1], [0], [0], [1], [0, 0, 1, 1], [], []>} : vector<8x32xf32>, vector<32x128xf32>, vector<8x128xf32> -> vector<8x128xf32>
    %c0_9 = arith.constant 0 : index
    %c0_10 = arith.constant 0 : index
    %10 = vector.load %arg5[%c0_9, %c0_10] : memref<1x128xf32, #tpu.memory_space<vmem>>, vector<1x128xf32>
    %11 = vector.broadcast %10 : vector<1x128xf32> to vector<8x128xf32>
    %12 = arith.addf %9, %11 : vector<8x128xf32>
    %c0_11 = arith.constant 0 : index
    %c0_12 = arith.constant 0 : index
    %13 = vector.load %arg6[%c0_11, %c0_12] : memref<128x32xf32, #tpu.memory_space<vmem>>, vector<128x32xf32>
    %cst_13 = arith.constant dense<0.000000e+00> : vector<8x32xf32>
    %14 = tpu.matmul %12, %13, %cst_13 {dimension_numbers = #tpu.dot_dimension_numbers<[1], [0], [0], [1], [0, 0, 1, 1], [], []>} : vector<8x128xf32>, vector<128x32xf32>, vector<8x32xf32> -> vector<8x32xf32>
    %c0_14 = arith.constant 0 : index
    %c0_15 = arith.constant 0 : index
    %15 = vector.load %arg7[%c0_14, %c0_15] : memref<1x32xf32, #tpu.memory_space<vmem>>, vector<1x32xf32>
    %16 = vector.broadcast %15 : vector<1x32xf32> to vector<8x32xf32>
    %17 = arith.addf %14, %16 : vector<8x32xf32>
    %cst_16 = arith.constant 0.000000e+00 : f32
    %18 = vector.broadcast %cst_16 : f32 to vector<8x32xf32>
    %19 = arith.maximumf %17, %18 : vector<8x32xf32>
    %c0_17 = arith.constant 0 : index
    %c0_18 = arith.constant 0 : index
    %20 = vector.load %arg8[%c0_17, %c0_18] : memref<32x128xf32, #tpu.memory_space<vmem>>, vector<32x128xf32>
    %cst_19 = arith.constant dense<0.000000e+00> : vector<8x128xf32>
    %21 = tpu.matmul %19, %20, %cst_19 {dimension_numbers = #tpu.dot_dimension_numbers<[1], [0], [0], [1], [0, 0, 1, 1], [], []>} : vector<8x32xf32>, vector<32x128xf32>, vector<8x128xf32> -> vector<8x128xf32>
    %c0_20 = arith.constant 0 : index
    %c0_21 = arith.constant 0 : index
    %22 = vector.load %arg9[%c0_20, %c0_21] : memref<1x128xf32, #tpu.memory_space<vmem>>, vector<1x128xf32>
    %23 = vector.broadcast %22 : vector<1x128xf32> to vector<8x128xf32>
    %24 = arith.addf %21, %23 : vector<8x128xf32>
    %c0_22 = arith.constant 0 : index
    %c0_23 = arith.constant 0 : index
    %25 = vector.load %arg10[%c0_22, %c0_23] : memref<128x128xf32, #tpu.memory_space<vmem>>, vector<128x128xf32>
    %cst_24 = arith.constant dense<0.000000e+00> : vector<8x128xf32>
    %26 = tpu.matmul %12, %25, %cst_24 {dimension_numbers = #tpu.dot_dimension_numbers<[1], [1], [0], [0], [0, 0, 1, 0], [], []>} : vector<8x128xf32>, vector<128x128xf32>, vector<8x128xf32> -> vector<8x128xf32>
    %27 = arith.mulf %12, %12 : vector<8x128xf32>
    %cst_25 = arith.constant dense<0.000000e+00> : vector<8xf32>
    %28 = vector.multi_reduction <add>, %27, %cst_25 [1] : vector<8x128xf32> to vector<8xf32>
    %29 = vector.shape_cast %28 : vector<8xf32> to vector<8x1xf32>
    %c0_26 = arith.constant 0 : index
    %c0_27 = arith.constant 0 : index
    %30 = vector.load %arg11[%c0_26, %c0_27] : memref<1x128xf32, #tpu.memory_space<vmem>>, vector<1x128xf32>
    %31 = vector.broadcast %29 : vector<8x1xf32> to vector<8x128xf32>
    %32 = vector.broadcast %30 : vector<1x128xf32> to vector<8x128xf32>
    %33 = arith.addf %31, %32 : vector<8x128xf32>
    %cst_28 = arith.constant 2.000000e+00 : f32
    %34 = vector.broadcast %cst_28 : f32 to vector<8x128xf32>
    %35 = arith.mulf %34, %26 : vector<8x128xf32>
    %36 = arith.subf %33, %35 : vector<8x128xf32>
    %cst_29 = arith.constant 0.000000e+00 : f32
    %37 = vector.broadcast %cst_29 : f32 to vector<8x128xf32>
    %38 = arith.maximumf %36, %37 : vector<8x128xf32>
    %cst_30 = arith.constant 1.000000e+00 : f32
    %39 = vector.broadcast %cst_30 : f32 to vector<8x128xf32>
    %40 = arith.mulf %38, %39 : vector<8x128xf32>
    %cst_31 = arith.constant 1.000000e+00 : f32
    %41 = vector.broadcast %cst_31 : f32 to vector<8x128xf32>
    %42 = arith.addf %41, %40 : vector<8x128xf32>
    %cst_32 = arith.constant 1.000000e+00 : f32
    %43 = vector.broadcast %cst_32 : f32 to vector<8x128xf32>
    %44 = arith.divf %43, %42 : vector<8x128xf32>
    %45 = arith.mulf %44, %44 : vector<8x128xf32>
    %cst_33 = arith.constant dense<0.000000e+00> : vector<8xf32>
    %46 = vector.multi_reduction <add>, %45, %cst_33 [1] : vector<8x128xf32> to vector<8xf32>
    %47 = vector.shape_cast %46 : vector<8xf32> to vector<8x1xf32>
    %48 = tpu.reciprocal %47 {approx = true} : vector<8x1xf32> -> vector<8x1xf32>
    %49 = vector.broadcast %48 : vector<8x1xf32> to vector<8x128xf32>
    %50 = arith.mulf %45, %49 : vector<8x128xf32>
    %c0_34 = arith.constant 0 : index
    %c0_35 = arith.constant 0 : index
    %51 = vector.load %arg12[%c0_34, %c0_35] : memref<8x128xf32, #tpu.memory_space<vmem>>, vector<8x128xf32>
    tpu.vector_store %arg12[%c0_34, %c0_35], %12 {strides = array<i32>} : memref<8x128xf32, #tpu.memory_space<vmem>>, vector<8x128xf32>,
    %c0_36 = arith.constant 0 : index
    %c0_37 = arith.constant 0 : index
    %52 = vector.load %arg13[%c0_36, %c0_37] : memref<8x128xf32, #tpu.memory_space<vmem>>, vector<8x128xf32>
    tpu.vector_store %arg13[%c0_36, %c0_37], %50 {strides = array<i32>} : memref<8x128xf32, #tpu.memory_space<vmem>>, vector<8x128xf32>,
    %c0_38 = arith.constant 0 : index
    %c0_39 = arith.constant 0 : index
    %53 = vector.load %arg14[%c0_38, %c0_39] : memref<8x128xf32, #tpu.memory_space<vmem>>, vector<8x128xf32>
    tpu.vector_store %arg14[%c0_38, %c0_39], %24 {strides = array<i32>} : memref<8x128xf32, #tpu.memory_space<vmem>>, vector<8x128xf32>,
    return
  }
  func.func @transform_0(%arg0: i32) -> (i32, i32) {
    %c0_i32 = arith.constant 0 : i32
    %c0_i32_0 = arith.constant 0 : i32
    return %arg0, %c0_i32 : i32, i32
  }
  func.func @transform_1(%arg0: i32) -> (i32, i32) {
    %c0_i32 = arith.constant 0 : i32
    %c0_i32_0 = arith.constant 0 : i32
    %c0_i32_1 = arith.constant 0 : i32
    return %c0_i32, %c0_i32_0 : i32, i32
  }
  func.func @transform_2(%arg0: i32) -> (i32, i32) {
    %c0_i32 = arith.constant 0 : i32
    %c0_i32_0 = arith.constant 0 : i32
    %c0_i32_1 = arith.constant 0 : i32
    return %c0_i32, %c0_i32_0 : i32, i32
  }
  func.func @transform_3(%arg0: i32) -> (i32, i32) {
    %c0_i32 = arith.constant 0 : i32
    %c0_i32_0 = arith.constant 0 : i32
    %c0_i32_1 = arith.constant 0 : i32
    return %c0_i32, %c0_i32_0 : i32, i32
  }
  func.func @transform_4(%arg0: i32) -> (i32, i32) {
    %c0_i32 = arith.constant 0 : i32
    %c0_i32_0 = arith.constant 0 : i32
    %c0_i32_1 = arith.constant 0 : i32
    return %c0_i32, %c0_i32_0 : i32, i32
  }
  func.func @transform_5(%arg0: i32) -> (i32, i32) {
    %c0_i32 = arith.constant 0 : i32
    %c0_i32_0 = arith.constant 0 : i32
    %c0_i32_1 = arith.constant 0 : i32
    return %c0_i32, %c0_i32_0 : i32, i32
  }
  func.func @transform_6(%arg0: i32) -> (i32, i32) {
    %c0_i32 = arith.constant 0 : i32
    %c0_i32_0 = arith.constant 0 : i32
    %c0_i32_1 = arith.constant 0 : i32
    return %c0_i32, %c0_i32_0 : i32, i32
  }
  func.func @transform_7(%arg0: i32) -> (i32, i32) {
    %c0_i32 = arith.constant 0 : i32
    %c0_i32_0 = arith.constant 0 : i32
    %c0_i32_1 = arith.constant 0 : i32
    return %c0_i32, %c0_i32_0 : i32, i32
  }
  func.func @transform_8(%arg0: i32) -> (i32, i32) {
    %c0_i32 = arith.constant 0 : i32
    %c0_i32_0 = arith.constant 0 : i32
    %c0_i32_1 = arith.constant 0 : i32
    return %c0_i32, %c0_i32_0 : i32, i32
  }
  func.func @transform_9(%arg0: i32) -> (i32, i32) {
    %c0_i32 = arith.constant 0 : i32
    %c0_i32_0 = arith.constant 0 : i32
    %c0_i32_1 = arith.constant 0 : i32
    return %c0_i32, %c0_i32_0 : i32, i32
  }
  func.func @transform_10(%arg0: i32) -> (i32, i32) {
    %c0_i32 = arith.constant 0 : i32
    %c0_i32_0 = arith.constant 0 : i32
    %c0_i32_1 = arith.constant 0 : i32
    return %c0_i32, %c0_i32_0 : i32, i32
  }
  func.func @transform_11(%arg0: i32) -> (i32, i32) {
    %c0_i32 = arith.constant 0 : i32
    %c0_i32_0 = arith.constant 0 : i32
    return %arg0, %c0_i32 : i32, i32
  }
  func.func @transform_12(%arg0: i32) -> (i32, i32) {
    %c0_i32 = arith.constant 0 : i32
    %c0_i32_0 = arith.constant 0 : i32
    return %arg0, %c0_i32 : i32, i32
  }
  func.func @transform_13(%arg0: i32) -> (i32, i32) {
    %c0_i32 = arith.constant 0 : i32
    %c0_i32_0 = arith.constant 0 : i32
    return %arg0, %c0_i32 : i32, i32
  }
}

</mosaic_0001>

<bundles_post_ra>
// kernel: tpu_custom_call.1
= control target key start
LH: loop header
LB: loop body
LE: loop exit
PB: predicated region body
PF: predicated region fallthrough
CT: control target
= control target key end

     0   :  { %s754_s25 = sld [smem:[#allocation0]]   ;;  %s921_s0 = inlined_call_operand.vmem [shape: f32[8,32], index: 0, kind: input, shape index: {}]   ;;  %s922_s1 = inlined_call_operand.vmem [shape: f32[32,32], index: 1, kind: input, shape index: {}]   ;;  %s923_s2 = inlined_call_operand.hbm [shape: f32[1,32], index: 2, kind: input, shape index: {}]   ;;  %s924_s3 = inlined_call_operand.hbm [shape: f32[32,128], index: 3, kind: input, shape index: {}]   ;;  %s925_s4 = inlined_call_operand.hbm [shape: f32[1,128], index: 4, kind: input, shape index: {}]   ;;  %s926_s5 = inlined_call_operand.vmem [shape: f32[128,32], index: 5, kind: input, shape index: {}]   ;;  %s927_s6 = inlined_call_operand.hbm [shape: f32[1,32], index: 6, kind: input, shape index: {}]   ;;  %s928_s7 = inlined_call_operand.hbm [shape: f32[32,128], index: 7, kind: input, shape index: {}]   ;;  %s929_s8 = inlined_call_operand.hbm [shape: f32[1,128], index: 8, kind: input, shape index: {}]   ;;  %s930_s9 = inlined_call_operand.vmem [shape: f32[128,128], index: 9, kind: input, shape index: {}]   ;;  %s931_s10 = inlined_call_operand.vmem [shape: f32[1,128], index: 10, kind: input, shape index: {}]   ;;  %s932_s11 = inlined_call_operand.hbm [shape: f32[8,128], index: 11, kind: output, shape index: {0}]   ;;  %s933_s12 = inlined_call_operand.hbm [shape: f32[8,128], index: 12, kind: output, shape index: {1}]   ;;  %s934_s13 = inlined_call_operand.hbm [shape: f32[8,128], index: 13, kind: output, shape index: {2}]  }
   0x1   :  { %19 = vsyncpa [#allocation3], 0 }
   0x2   :  { %20 = vsyncpa [#allocation6], 0 }
   0x3   :  { %21 = vsyncpa [#allocation9], 0 }
   0x4   :  { %22 = vsyncpa [#allocation12], 0 }
   0x5   :  { %23 = vsyncpa [#allocation4], 0  ;;  %s48_s28 = sshll.u32 %s924_s3, 4  ;;  %s49_s28 = int_to_ptr.hbm [resolvable:$true] %s48_s28 }
   0x6   :  { %24 = vsyncpa [#allocation15], 0  ;;  %s673_s29 = smov [#allocation5]   ;;  %s75_s16 = sshll.u32 %s927_s6, 4  ;;  %s76_s16 = int_to_ptr.hbm [resolvable:$true] %s75_s16 }
   0x7   :  { %s50_s30 = sshll.u32 %s673_s29, 4  ;;  %s674_s17 = smov 128   ;;  %s51_s30 = int_to_ptr.vmem [resolvable:$true] %s50_s30 }
   0x8   :  { %s675_s18 = smov 8   ;;  %s676_s19 = smov [#allocation8]  }
   0x9   :  { %56 = dma.hbm_to_vmem [thread:$0]  %s49_s28, 512, %s51_s30, [#allocation6], %s674_s17, %s674_s17, %s675_s18  }
   0xa   :  { %s77_s20 = sshll.u32 %s676_s19, 4  ;;  %s38_s22 = sshll.u32 %s923_s2, 4  ;;  %s78_s20 = int_to_ptr.vmem [resolvable:$true] %s77_s20  ;;  %s39_s22 = int_to_ptr.hbm [resolvable:$true] %s38_s22 }
   0xb   :  { %80 = dma.hbm_to_vmem [thread:$0]  %s76_s16, 16, %s78_s20, [#allocation9]  }
   0xc   :  { %s62_s6 = sshll.u32 %s925_s4, 4  ;;  %s677_s26 = smov [#allocation2]   ;;  %s63_s6 = int_to_ptr.hbm [resolvable:$true] %s62_s6 }
   0xd   :  { %s40_s27 = sshll.u32 %s677_s26, 4  ;;  %s678_s28 = smov [#allocation7]   ;;  %s41_s27 = int_to_ptr.vmem [resolvable:$true] %s40_s27 }
   0xe   :  { %43 = dma.hbm_to_vmem [thread:$0]  %s39_s22, 16, %s41_s27, [#allocation3]  }
   0xf   :  { %s64_s29 = sshll.u32 %s678_s28, 4  ;;  %s85_s15 = sshll.u32 %s928_s7, 4  ;;  %s65_s29 = int_to_ptr.vmem [resolvable:$true] %s64_s29  ;;  %s86_s15 = int_to_ptr.hbm [resolvable:$true] %s85_s15 }
  0x10   :  { %67 = dma.hbm_to_vmem [thread:$0]  %s63_s6, 16, %s65_s29, [#allocation6]  }
  0x11   :  { %s99_s19 = sshll.u32 %s929_s8, 4  ;;  %s679_s20 = smov [#allocation10]   ;;  %s100_s19 = int_to_ptr.hbm [resolvable:$true] %s99_s19 }
  0x12   :  { %s87_s4 = sshll.u32 %s679_s20, 4  ;;  %s680_s21 = smov [#allocation11]   ;;  %s88_s4 = int_to_ptr.vmem [resolvable:$true] %s87_s4 }
  0x13   :  { %93 = dma.hbm_to_vmem [thread:$0]  %s86_s15, 512, %s88_s4, [#allocation9], %s674_s17, %s674_s17, %s675_s18  }
  0x14   :  { %s101_s3 = sshll.u32 %s680_s21, 4  ;;  %s102_s3 = int_to_ptr.vmem [resolvable:$true] %s101_s3 }
  0x15   :  { %104 = dma.hbm_to_vmem [thread:$0]  %s100_s19, 16, %s102_s3, [#allocation12]  }
  0x16   :  { %661 = dma.done.wait [#allocation3], 16  }
  0x17   :  { %662 = vsyncadd [#allocation3], 4294967280 }
  0x18   :  { %663 = dma.done.wait [#allocation6], 528  }
  0x19   :  { %664 = vsyncadd [#allocation6], 4294966768 }
  0x1a   :  { %665 = dma.done.wait [#allocation9], 528  }
  0x1b   :  { %666 = vsyncadd [#allocation9], 4294966768 }
  0x1c   :  { %667 = dma.done.wait [#allocation12], 16  }
  0x1d   :  { %668 = vsyncadd [#allocation12], 4294967280  ;;  %v145_v0 = vld [vmem:[%s922_s1 + $0x18] sm:$0xff]  ;;  %v144_v1 = vld [vmem:[%s922_s1 + $0x10] sm:$0xff]  ;;  %vm150_vm0 = vcmask 261120   ;;  %s681_s18 = smov [#allocation13]  }
  0x1e   :  { %166 = vmatpush.msra.mxu1 %v145_v0  ;;  %v143_v2 = vld [vmem:[%s922_s1 + $0x8] sm:$0xff]  ;;  %v142_v3 = vld [vmem:[%s922_s1] sm:$0xff]  ;;  %v177_v6 = vld [vmem:[#allocation5 + $0x10] sm:$0xff]  ;;  %s356_s24 = sshll.u32 %s681_s18, 4  ;;  %s605_s29 = scalar_lea.hbm %s932_s11, 8  ;;  %s357_s24 = int_to_ptr.vmem [resolvable:$true] %s356_s24 }
  0x1f   :  { %v141_v4 = vld [vmem:[%s921_s0] sm:$0xff]  ;;  %v176_v7 = vld [vmem:[#allocation5 + $0x8] sm:$0xff]  ;;  %v293_v9 = vld [vmem:[%s930_s9 + $0x78] sm:$0xff] }
  0x20   :  { %167 = vmatpush.msra.mxu1 %v144_v1  ;;  %v178_v5 = vld [vmem:[#allocation5 + $0x18] sm:$0xff]  ;;  %v175_v8 = vld [vmem:[#allocation5] sm:$0xff]  ;;  %294 = vmatpush.xpose.msra.mxu0 %v293_v9  ;;  %v292_v10 = vld [vmem:[%s930_s9 + $0x70] sm:$0xff] }
  0x21   :  { %v221_v11 = vld [vmem:[%s926_s5 + $0x78] sm:$0xff]  ;;  %v220_v12 = vld [vmem:[%s926_s5 + $0x70] sm:$0xff]  ;;  %v219_v13 = vld [vmem:[%s926_s5 + $0x68] sm:$0xff] }
  0x22   :  { %168 = vmatpush.msra.mxu1 %v143_v2  ;;  %226 = vmatpush.msra.mxu2 %v221_v11  ;;  %v291_v14 = vld [vmem:[%s930_s9 + $0x68] sm:$0xff]  ;;  %v218_v15 = vld [vmem:[%s926_s5 + $0x60] sm:$0xff]  ;;  %v217_v16 = vld [vmem:[%s926_s5 + $0x58] sm:$0xff] }
  0x23   :  { %v290_v17 = vld [vmem:[%s930_s9 + $0x60] sm:$0xff]  ;;  %v216_v18 = vld [vmem:[%s926_s5 + $0x50] sm:$0xff]  ;;  %v215_v19 = vld [vmem:[%s926_s5 + $0x48] sm:$0xff] }
  0x24   :  { %169 = vmatpush.msra.mxu1 %v142_v3  ;;  %295 = vmatpush.xpose.msra.mxu0 %v292_v10  ;;  %v289_v20 = vld [vmem:[%s930_s9 + $0x58] sm:$0xff]  ;;  %v214_v21 = vld [vmem:[%s926_s5 + $0x40] sm:$0xff]  ;;  %v288_v23 = vld [vmem:[%s930_s9 + $0x50] sm:$0xff] }
  0x25   :  { %419 = vmatmul.msk.f32.vlgmr.msra.gmra.mxu1 %vm150_vm0, %v141_v4  ;;  %227 = vmatpush.msra.mxu2 %v220_v12  ;;  %v213_v22 = vld [vmem:[%s926_s5 + $0x38] sm:$0xff]  ;;  %v212_v24 = vld [vmem:[%s926_s5 + $0x30] sm:$0xff]  ;;  %v211_v25 = vld [vmem:[%s926_s5 + $0x28] sm:$0xff] }
  0x26   :  { %198 = vmatpush.msrb.mxu1 %v178_v5  ;;  %v287_v26 = vld [vmem:[%s930_s9 + $0x48] sm:$0xff]  ;;  %v210_v27 = vld [vmem:[%s926_s5 + $0x20] sm:$0xff]  ;;  %v209_v29 = vld [vmem:[%s926_s5 + $0x18] sm:$0xff] }
  0x27   :  { %228 = vmatpush.msra.mxu2 %v219_v13  ;;  %v436_v28 = vld [vmem:[#allocation2] ss:$0 sm:$0xff]  ;;  %v208_v31 = vld [vmem:[%s926_s5 + $0x10] sm:$0xff]  ;;  %v285_v35 = vld [vmem:[%s930_s9 + $0x38] sm:$0xff] }
  0x28   :  { %199 = vmatpush.msrb.mxu1 %v177_v6  ;;  %296 = vmatpush.xpose.msra.mxu0 %v291_v14  ;;  %v286_v30 = vld [vmem:[%s930_s9 + $0x40] sm:$0xff]  ;;  %v284_v36 = vld [vmem:[%s930_s9 + $0x30] sm:$0xff]  ;;  %v283_v37 = vld [vmem:[%s930_s9 + $0x28] sm:$0xff] }
  0x29   :  { %229 = vmatpush.msra.mxu2 %v218_v15  ;;  %v282_v38 = vld [vmem:[%s930_s9 + $0x20] sm:$0xff]  ;;  %v281_v39 = vld [vmem:[%s930_s9 + $0x18] sm:$0xff]  ;;  %v280_v40 = vld [vmem:[%s930_s9 + $0x10] sm:$0xff] }
  0x2a   :  { %200 = vmatpush.msrb.mxu1 %v176_v7  ;;  %v279_v41 = vld [vmem:[%s930_s9 + $0x8] sm:$0xff]  ;;  %v278_v43 = vld [vmem:[%s930_s9] sm:$0xff]  ;;  %v249_v50 = vld [vmem:[#allocation10 + $0x10] sm:$0xff] }
  0x2b   :  { %230 = vmatpush.msra.mxu2 %v217_v16  ;;  %v207_v42 = vld [vmem:[%s926_s5 + $0x8] sm:$0xff]  ;;  %v206_v44 = vld [vmem:[%s926_s5] sm:$0xff]  ;;  %s898_s5 = sshll.u32 %s754_s25, 3 }
  0x2c   :  { %201 = vmatpush.msrb.mxu1 %v175_v8  ;;  %297 = vmatpush.xpose.msra.mxu0 %v290_v17  ;;  %v437_v45 = vld [vmem:[#allocation7] ss:$0 sm:$0xff]  ;;  %v248_v51 = vld [vmem:[#allocation10 + $0x8] sm:$0xff]  ;;  %v247_v52 = vld [vmem:[#allocation10] sm:$0xff]  ;;  %s354_s17 = scalar_lea.hbm %s932_s11, %s898_s5 }
  0x2d   :  { %231 = vmatpush.msra.mxu2 %v216_v18  ;;  %v250_v49 = vld [vmem:[#allocation10 + $0x18] sm:$0xff]  ;;  %s358_s6 = sshll.u32 %s354_s17, 4  ;;  %s359_s6 = int_to_ptr.hbm [resolvable:$true] %s358_s6 }
  0x2e   :  { %270 = vmatpush.msra.mxu3 %v250_v49  ;;  %v438_v53 = vld [vmem:[%s931_s10] ss:$0 sm:$0xff]  ;;  %v439_v59 = vld [vmem:[#allocation8] ss:$0 sm:$0xff]  ;;  %s601_s26 = sshra.s32 %s359_s6, 4  ;;  %s602_s26 = int_to_ptr.hbm [resolvable:$true] %s601_s26 }
  0x2f   :  { %232 = vmatpush.msra.mxu2 %v215_v19  ;;  %s603_s27 = scalar_lea.hbm %s602_s26, 8 }
  0x30   :  { %298 = vmatpush.xpose.msra.mxu0 %v289_v20  ;;  %271 = vmatpush.msra.mxu3 %v249_v50  ;;  %p604_p0 = scmp.ne.s32.totalorder %s602_s26, %s603_s27  ;;  %p607_p1 = scmp.lt.s32.totalorder %s605_s29, %s603_s27 }
  0x31   :  { %233 = vmatpush.msra.mxu2 %v214_v21 }
  0x32   :  { %272 = vmatpush.msra.mxu3 %v248_v51  ;;  %p609_p2 = pnand %p607_p1, %p604_p0 }
  0x33   :  { %234 = vmatpush.msra.mxu2 %v213_v22 }
  0x34   :  { %299 = vmatpush.xpose.msra.mxu0 %v288_v23  ;;  %273 = vmatpush.msra.mxu3 %v247_v52 }
  0x35   :  { %235 = vmatpush.msra.mxu2 %v212_v24 }
  0x37   :  { %236 = vmatpush.msra.mxu2 %v211_v25 }
  0x38   :  { %300 = vmatpush.xpose.msra.mxu0 %v287_v26 }
  0x39   :  { %237 = vmatpush.msra.mxu2 %v210_v27 }
  0x3b   :  { %238 = vmatpush.msra.mxu2 %v209_v29 }
  0x3c   :  { %301 = vmatpush.xpose.msra.mxu0 %v286_v30 }
  0x3d   :  { %239 = vmatpush.msra.mxu2 %v208_v31 }
  0x3f   :  { %240 = vmatpush.msra.mxu2 %v207_v42 }
  0x40   :  { %302 = vmatpush.xpose.msra.mxu0 %v285_v35 }
  0x41   :  { %241 = vmatpush.msra.mxu2 %v206_v44 }
  0x44   :  { %303 = vmatpush.xpose.msra.mxu0 %v284_v36 }
  0x48   :  { %304 = vmatpush.xpose.msra.mxu0 %v283_v37 }
  0x4c   :  { %305 = vmatpush.xpose.msra.mxu0 %v282_v38 }
  0x50   :  { %306 = vmatpush.xpose.msra.mxu0 %v281_v39 }
  0x54   :  { %307 = vmatpush.xpose.msra.mxu0 %v280_v40 }
  0x58   :  { %308 = vmatpush.xpose.msra.mxu0 %v279_v41 }
  0x5c   :  { %309 = vmatpush.xpose.msra.mxu0 %v278_v43 }
  0xa2   :  { %v171_v32 = vpop.f32.mrf.mxu1 }
  0xa3   :  { %v172_v33 = vadd.f32 %v436_v28, %v171_v32 }
  0xa5   :  { %v174_v34 = vmax.f32 %v172_v33, 0.0 }
  0xa7   :  { %420 = vmatmul.msk.f32.vlgmr.msrb.gmra.mxu1 %vm150_vm0, %v174_v34 }
 0x124   :  { %v203_v46 = vpop.f32.mrf.mxu1 }
 0x125   :  { %v204_v47 = vadd.f32 %v437_v45, %v203_v46 }
 0x127   :  { %346 = vst [vmem:[#allocation13] sm:$0xff] %v204_v47  ;;  %242 = vmatmul.f32.vlgmr.msra.gmra.mxu2 %v204_v47  ;;  %310 = vmatmul.f32.vlgmr.msra.gmra.mxu0 %v204_v47  ;;  %v314_v48 = vmul.f32 %v204_v47, %v204_v47 }
 0x129   :  { %315 = vadd.xlane.f32.xlu0 %v314_v48 }
 0x19c   :  { %v316_v54 = vpop.xlane.xlu0 %315 }
 0x19d   :  { %v321_v56 = vadd.f32 %v438_v53, %v316_v54 }
 0x1a4   :  { %v311_v55 = vpop.f32.mrf.mxu0 }
 0x1a5   :  { %v322_v57 = vmul.f32 2.0, %v311_v55 }
 0x1a7   :  { %v323_v58 = vsub.f32 %v321_v56, %v322_v57 }
 0x1a9   :  { %v324_v60 = vmax.f32 %v323_v58, 0.0 }
 0x1aa   :  { %v243_v61 = vpop.f32.mrf.mxu2 }
 0x1ab   :  { %v325_v62 = vadd.f32 1.0, %v324_v60  ;;  %v244_v63 = vadd.f32 %v439_v59, %v243_v61 }
 0x1ad   :  { %441 = vrcp.f32 %v325_v62  ;;  %v246_v0 = vmax.f32 %v244_v63, 0.0  ;;  %v337_v4 = vand.u32 2147483648, %v325_v62  ;;  %v335_v6 = vand.u32 2147483647, %v325_v62 }
 0x1ae   :  { %vm331_vm2 = vweird.f32 %v325_v62 }
 0x1af   :  { %421 = vmatmul.msk.f32.vlgmr.msra.gmra.mxu3 %vm150_vm0, %v246_v0  ;;  %v338_v8 = vor.u32 1.1754944e-38, %v337_v4  ;;  %vm336_vm4 = vcmp.eq.f32.partialorder %v335_v6, 8.507059e+37 }
 0x1b3   :  { %v442_v1 = vpop.eup %441 }
 0x1b4   :  { %v327_v2 = vmul.f32 %v442_v1, %v325_v62  ;;  %vm332_vm1 = vweird.f32 %v442_v1 }
 0x1b5   :  { %vm333_vm3 = vmor %vm331_vm2, %vm332_vm1 }
 0x1b6   :  { %v328_v3 = vsub.f32 1.0, %v327_v2 }
 0x1b8   :  { %v329_v5 = vmul.f32 %v442_v1, %v328_v3 }
 0x1ba   :  { %v330_v7 = vadd.f32 %v442_v1, %v329_v5 }
 0x1bc   :  { %v334_v9 = vsel %vm333_vm3, %v442_v1, %v330_v7 }
 0x1bd   :  { %v339_v10 = vsel %vm336_vm4, %v338_v8, %v334_v9 }
 0x1be   :  { %v341_v11 = vmul.f32 %v339_v10, %v339_v10 }
 0x1c0   :  { %342 = vadd.xlane.f32.xlu0 %v341_v11 }
 0x1c1   :  { %612 = shalt.err (!%p609_p2)
}
 0x1c2   :  { %361 = dma.vmem_to_hbm [thread:$0]  %s357_s24, 128, %s359_s6, [#allocation4]   ;;  %v440_v12 = vld [vmem:[#allocation11] ss:$0 sm:$0xff] }
 0x1c3   :  { %s367_s0 = scalar_lea.hbm %s933_s12, %s898_s5  ;;  %s380_s11 = scalar_lea.hbm %s934_s13, %s898_s5 }
 0x1c4   :  { %s682_s2 = smov [#allocation14]   ;;  %s371_s19 = sshll.u32 %s367_s0, 4  ;;  %s372_s19 = int_to_ptr.hbm [resolvable:$true] %s371_s19 }
 0x1c5   :  { %s369_s16 = sshll.u32 %s682_s2, 4  ;;  %s683_s20 = smov [#allocation16]   ;;  %s370_s16 = int_to_ptr.vmem [resolvable:$true] %s369_s16 }
 0x1c6   :  { %s382_s4 = sshll.u32 %s683_s20, 4  ;;  %s384_s21 = sshll.u32 %s380_s11, 4  ;;  %s383_s4 = int_to_ptr.vmem [resolvable:$true] %s382_s4  ;;  %s385_s21 = int_to_ptr.hbm [resolvable:$true] %s384_s21 }
 0x1c7   :  { %s625_s3 = sshra.s32 %s372_s19, 4  ;;  %s629_s22 = scalar_lea.hbm %s933_s12, 8  ;;  %s626_s3 = int_to_ptr.hbm [resolvable:$true] %s625_s3 }
 0x1c8   :  { %s627_s7 = scalar_lea.hbm %s626_s3, 8 }
 0x1c9   :  { %p628_p3 = scmp.ne.s32.totalorder %s626_s3, %s627_s7  ;;  %p631_p4 = scmp.lt.s32.totalorder %s629_s22, %s627_s7 }
 0x1cb   :  { %p633_p5 = pnand %p631_p4, %p628_p3 }
 0x232   :  { %v275_v13 = vpop.f32.mrf.mxu3 }
 0x233   :  { %v276_v14 = vadd.f32 %v440_v12, %v275_v13  ;;  %v343_v15 = vpop.xlane.xlu0 %342 }
 0x234   :  { %443 = vrcp.f32 %v343_v15 }
 0x235   :  { %348 = vst [vmem:[#allocation16] sm:$0xff] %v276_v14 }
 0x23a   :  { %v444_v16 = vpop.eup %443 }
 0x23b   :  { %v345_v17 = vmul.f32 %v444_v16, %v341_v11 }
 0x23d   :  { %347 = vst [vmem:[#allocation14] sm:$0xff] %v345_v17 }
 0x23e   :  { %636 = shalt.err (!%p633_p5)
}
 0x23f   :  { %374 = dma.vmem_to_hbm [thread:$0]  %s370_s16, 128, %s372_s19, [#allocation15]  }
 0x240   :  { %s649_s5 = sshra.s32 %s385_s21, 4  ;;  %s653_s18 = scalar_lea.hbm %s934_s13, 8  ;;  %s650_s5 = int_to_ptr.hbm [resolvable:$true] %s649_s5 }
 0x241   :  { %s651_s10 = scalar_lea.hbm %s650_s5, 8 }
 0x242   :  { %p652_p6 = scmp.ne.s32.totalorder %s650_s5, %s651_s10  ;;  %p655_p7 = scmp.lt.s32.totalorder %s653_s18, %s651_s10 }
 0x244   :  { %p657_p8 = pnand %p655_p7, %p652_p6 }
 0x246   :  { %660 = shalt.err (!%p657_p8)
}
 0x247   :  { %387 = dma.vmem_to_hbm [thread:$0]  %s383_s4, 128, %s385_s21, [#allocation15]  }
 0x248   :  { %669 = dma.done.wait [#allocation4], 128  }
 0x249   :  { %670 = vsyncadd [#allocation4], 4294967168 }
 0x24a   :  { %671 = dma.done.wait [#allocation15], 256  }
 0x24b   :  { %672 = vsyncadd [#allocation15], 4294967040 }
 0x24c   :  { %400 = vsyncpa [#allocation3], 1 }
 0x24d   :  { %401 = vsyncpa [#allocation6], 1 }
 0x24e   :  { %402 = vsyncpa [#allocation9], 1 }
 0x24f   :  { %403 = vsyncpa [#allocation12], 1 }
 0x250   :  { %404 = vsyncpa [#allocation4], 1 }
 0x251   :  { %405 = vsyncpa [#allocation15], 1 }

// kernel: tpu_custom_call.1
= control target key start
LH: loop header
LB: loop body
LE: loop exit
PB: predicated region body
PF: predicated region fallthrough
CT: control target
= control target key end

     0   :  { %19 = vsyncpa [#allocation3], 0  ;;  %s870_s0 = inlined_call_operand.vmem [shape: f32[8,32], index: 0, kind: input, shape index: {}]   ;;  %s871_s1 = inlined_call_operand.vmem [shape: f32[32,32], index: 1, kind: input, shape index: {}]   ;;  %s872_s2 = inlined_call_operand.hbm [shape: f32[1,32], index: 2, kind: input, shape index: {}]   ;;  %s873_s3 = inlined_call_operand.hbm [shape: f32[32,128], index: 3, kind: input, shape index: {}]   ;;  %s874_s4 = inlined_call_operand.hbm [shape: f32[1,128], index: 4, kind: input, shape index: {}]   ;;  %s875_s5 = inlined_call_operand.vmem [shape: f32[128,32], index: 5, kind: input, shape index: {}]   ;;  %s876_s6 = inlined_call_operand.hbm [shape: f32[1,32], index: 6, kind: input, shape index: {}]   ;;  %s877_s7 = inlined_call_operand.hbm [shape: f32[32,128], index: 7, kind: input, shape index: {}]   ;;  %s878_s8 = inlined_call_operand.hbm [shape: f32[1,128], index: 8, kind: input, shape index: {}]   ;;  %s879_s9 = inlined_call_operand.vmem [shape: f32[128,128], index: 9, kind: input, shape index: {}]   ;;  %s880_s10 = inlined_call_operand.vmem [shape: f32[1,128], index: 10, kind: input, shape index: {}]   ;;  %s881_s11 = inlined_call_operand.hbm [shape: f32[8,128], index: 11, kind: output, shape index: {0}]   ;;  %s882_s12 = inlined_call_operand.hbm [shape: f32[8,128], index: 12, kind: output, shape index: {1}]   ;;  %s883_s13 = inlined_call_operand.hbm [shape: f32[8,128], index: 13, kind: output, shape index: {2}]  }
   0x1   :  { %20 = vsyncpa [#allocation6], 0 }
   0x2   :  { %21 = vsyncpa [#allocation9], 0 }
   0x3   :  { %22 = vsyncpa [#allocation12], 0 }
   0x4   :  { %23 = vsyncpa [#allocation4], 0  ;;  %s44_s27 = sshll.u32 %s873_s3, 4  ;;  %s45_s27 = int_to_ptr.hbm [resolvable:$true] %s44_s27 }
   0x5   :  { %24 = vsyncpa [#allocation15], 0  ;;  %s639_s28 = smov [#allocation5]   ;;  %s71_s15 = sshll.u32 %s876_s6, 4  ;;  %s72_s15 = int_to_ptr.hbm [resolvable:$true] %s71_s15 }
   0x6   :  { %s46_s29 = sshll.u32 %s639_s28, 4  ;;  %s640_s16 = smov 128   ;;  %s47_s29 = int_to_ptr.vmem [resolvable:$true] %s46_s29 }
   0x7   :  { %s641_s17 = smov 8   ;;  %s642_s18 = smov [#allocation8]  }
   0x8   :  { %52 = dma.hbm_to_vmem [thread:$0]  %s45_s27, 512, %s47_s29, [#allocation6], %s640_s16, %s640_s16, %s641_s17  }
   0x9   :  { %s73_s19 = sshll.u32 %s642_s18, 4  ;;  %s34_s21 = sshll.u32 %s872_s2, 4  ;;  %s74_s19 = int_to_ptr.vmem [resolvable:$true] %s73_s19  ;;  %s35_s21 = int_to_ptr.hbm [resolvable:$true] %s34_s21 }
   0xa   :  { %76 = dma.hbm_to_vmem [thread:$0]  %s72_s15, 16, %s74_s19, [#allocation9]  }
   0xb   :  { %s58_s6 = sshll.u32 %s874_s4, 4  ;;  %s643_s24 = smov [#allocation2]   ;;  %s59_s6 = int_to_ptr.hbm [resolvable:$true] %s58_s6 }
   0xc   :  { %s36_s25 = sshll.u32 %s643_s24, 4  ;;  %s644_s26 = smov [#allocation7]   ;;  %s37_s25 = int_to_ptr.vmem [resolvable:$true] %s36_s25 }
   0xd   :  { %39 = dma.hbm_to_vmem [thread:$0]  %s35_s21, 16, %s37_s25, [#allocation3]  }
   0xe   :  { %s60_s27 = sshll.u32 %s644_s26, 4  ;;  %s81_s30 = sshll.u32 %s877_s7, 4  ;;  %s61_s27 = int_to_ptr.vmem [resolvable:$true] %s60_s27  ;;  %s82_s30 = int_to_ptr.hbm [resolvable:$true] %s81_s30 }
   0xf   :  { %63 = dma.hbm_to_vmem [thread:$0]  %s59_s6, 16, %s61_s27, [#allocation6]  }
  0x10   :  { %s95_s15 = sshll.u32 %s878_s8, 4  ;;  %s645_s18 = smov [#allocation10]   ;;  %s96_s15 = int_to_ptr.hbm [resolvable:$true] %s95_s15 }
  0x11   :  { %s83_s4 = sshll.u32 %s645_s18, 4  ;;  %s646_s19 = smov [#allocation11]   ;;  %s84_s4 = int_to_ptr.vmem [resolvable:$true] %s83_s4 }
  0x12   :  { %89 = dma.hbm_to_vmem [thread:$0]  %s82_s30, 512, %s84_s4, [#allocation9], %s640_s16, %s640_s16, %s641_s17  }
  0x13   :  { %s97_s20 = sshll.u32 %s646_s19, 4  ;;  %s98_s20 = int_to_ptr.vmem [resolvable:$true] %s97_s20 }
  0x14   :  { %100 = dma.hbm_to_vmem [thread:$0]  %s96_s15, 16, %s98_s20, [#allocation12]  }
  0x15   :  { %627 = dma.done.wait [#allocation3], 16  }
  0x16   :  { %628 = vsyncadd [#allocation3], 4294967280 }
  0x17   :  { %629 = dma.done.wait [#allocation6], 528  }
  0x18   :  { %630 = vsyncadd [#allocation6], 4294966768 }
  0x19   :  { %631 = dma.done.wait [#allocation9], 528  }
  0x1a   :  { %632 = vsyncadd [#allocation9], 4294966768 }
  0x1b   :  { %633 = dma.done.wait [#allocation12], 16  }
  0x1c   :  { %634 = vsyncadd [#allocation12], 4294967280  ;;  %v133_v0 = vld [vmem:[%s871_s1 + $0x18] sm:$0xff]  ;;  %v132_v1 = vld [vmem:[%s871_s1 + $0x10] sm:$0xff]  ;;  %vm138_vm0 = vcmask 261120   ;;  %s344_s7 = sshll.u32 %s881_s11, 4  ;;  %s345_s7 = int_to_ptr.hbm [resolvable:$true] %s344_s7 }
  0x1d   :  { %154 = vmatpush.msra.mxu1 %v133_v0  ;;  %v131_v2 = vld [vmem:[%s871_s1 + $0x8] sm:$0xff]  ;;  %v130_v3 = vld [vmem:[%s871_s1] sm:$0xff]  ;;  %v165_v6 = vld [vmem:[#allocation5 + $0x10] sm:$0xff]  ;;  %s647_s8 = smov [#allocation13]   ;;  %s648_s21 = smov [#allocation14]  }
  0x1e   :  { %v129_v4 = vld [vmem:[%s870_s0] sm:$0xff]  ;;  %v164_v7 = vld [vmem:[#allocation5 + $0x8] sm:$0xff]  ;;  %v281_v9 = vld [vmem:[%s879_s9 + $0x78] sm:$0xff]  ;;  %s342_s3 = sshll.u32 %s647_s8, 4  ;;  %s353_s16 = sshll.u32 %s648_s21, 4  ;;  %s343_s3 = int_to_ptr.vmem [resolvable:$true] %s342_s3  ;;  %s354_s16 = int_to_ptr.vmem [resolvable:$true] %s353_s16 }
  0x1f   :  { %155 = vmatpush.msra.mxu1 %v132_v1  ;;  %v166_v5 = vld [vmem:[#allocation5 + $0x18] sm:$0xff]  ;;  %v163_v8 = vld [vmem:[#allocation5] sm:$0xff]  ;;  %282 = vmatpush.xpose.msra.mxu0 %v281_v9  ;;  %v280_v10 = vld [vmem:[%s879_s9 + $0x70] sm:$0xff]  ;;  %s355_s23 = sshll.u32 %s882_s12, 4  ;;  %s649_s6 = smov [#allocation16]   ;;  %s356_s23 = int_to_ptr.hbm [resolvable:$true] %s355_s23 }
  0x20   :  { %v209_v11 = vld [vmem:[%s875_s5 + $0x78] sm:$0xff]  ;;  %v208_v12 = vld [vmem:[%s875_s5 + $0x70] sm:$0xff]  ;;  %v207_v13 = vld [vmem:[%s875_s5 + $0x68] sm:$0xff]  ;;  %s364_s11 = sshll.u32 %s649_s6, 4  ;;  %s366_s26 = sshll.u32 %s883_s13, 4  ;;  %s365_s11 = int_to_ptr.vmem [resolvable:$true] %s364_s11  ;;  %s367_s26 = int_to_ptr.hbm [resolvable:$true] %s366_s26 }
  0x21   :  { %156 = vmatpush.msra.mxu1 %v131_v2  ;;  %214 = vmatpush.msra.mxu2 %v209_v11  ;;  %v279_v14 = vld [vmem:[%s879_s9 + $0x68] sm:$0xff]  ;;  %v206_v15 = vld [vmem:[%s875_s5 + $0x60] sm:$0xff]  ;;  %v205_v16 = vld [vmem:[%s875_s5 + $0x58] sm:$0xff] }
  0x22   :  { %v278_v17 = vld [vmem:[%s879_s9 + $0x60] sm:$0xff]  ;;  %v204_v18 = vld [vmem:[%s875_s5 + $0x50] sm:$0xff]  ;;  %v203_v19 = vld [vmem:[%s875_s5 + $0x48] sm:$0xff] }
  0x23   :  { %157 = vmatpush.msra.mxu1 %v130_v3  ;;  %283 = vmatpush.xpose.msra.mxu0 %v280_v10  ;;  %v277_v20 = vld [vmem:[%s879_s9 + $0x58] sm:$0xff]  ;;  %v202_v21 = vld [vmem:[%s875_s5 + $0x40] sm:$0xff]  ;;  %v276_v23 = vld [vmem:[%s879_s9 + $0x50] sm:$0xff] }
  0x24   :  { %388 = vmatmul.msk.f32.vlgmr.msra.gmra.mxu1 %vm138_vm0, %v129_v4  ;;  %215 = vmatpush.msra.mxu2 %v208_v12  ;;  %v201_v22 = vld [vmem:[%s875_s5 + $0x38] sm:$0xff]  ;;  %v200_v24 = vld [vmem:[%s875_s5 + $0x30] sm:$0xff]  ;;  %v199_v25 = vld [vmem:[%s875_s5 + $0x28] sm:$0xff] }
  0x25   :  { %186 = vmatpush.msrb.mxu1 %v166_v5  ;;  %v275_v26 = vld [vmem:[%s879_s9 + $0x48] sm:$0xff]  ;;  %v198_v27 = vld [vmem:[%s875_s5 + $0x20] sm:$0xff]  ;;  %v197_v29 = vld [vmem:[%s875_s5 + $0x18] sm:$0xff] }
  0x26   :  { %216 = vmatpush.msra.mxu2 %v207_v13  ;;  %v402_v28 = vld [vmem:[#allocation2] ss:$0 sm:$0xff]  ;;  %v196_v31 = vld [vmem:[%s875_s5 + $0x10] sm:$0xff]  ;;  %v273_v35 = vld [vmem:[%s879_s9 + $0x38] sm:$0xff] }
  0x27   :  { %187 = vmatpush.msrb.mxu1 %v165_v6  ;;  %284 = vmatpush.xpose.msra.mxu0 %v279_v14  ;;  %v274_v30 = vld [vmem:[%s879_s9 + $0x40] sm:$0xff]  ;;  %v272_v36 = vld [vmem:[%s879_s9 + $0x30] sm:$0xff]  ;;  %v271_v37 = vld [vmem:[%s879_s9 + $0x28] sm:$0xff] }
  0x28   :  { %217 = vmatpush.msra.mxu2 %v206_v15  ;;  %v270_v38 = vld [vmem:[%s879_s9 + $0x20] sm:$0xff]  ;;  %v269_v39 = vld [vmem:[%s879_s9 + $0x18] sm:$0xff]  ;;  %v268_v40 = vld [vmem:[%s879_s9 + $0x10] sm:$0xff] }
  0x29   :  { %188 = vmatpush.msrb.mxu1 %v164_v7  ;;  %v267_v41 = vld [vmem:[%s879_s9 + $0x8] sm:$0xff]  ;;  %v266_v43 = vld [vmem:[%s879_s9] sm:$0xff]  ;;  %v237_v50 = vld [vmem:[#allocation10 + $0x10] sm:$0xff] }
  0x2a   :  { %218 = vmatpush.msra.mxu2 %v205_v16  ;;  %v195_v42 = vld [vmem:[%s875_s5 + $0x8] sm:$0xff]  ;;  %v194_v44 = vld [vmem:[%s875_s5] sm:$0xff] }
  0x2b   :  { %189 = vmatpush.msrb.mxu1 %v163_v8  ;;  %285 = vmatpush.xpose.msra.mxu0 %v278_v17  ;;  %v403_v45 = vld [vmem:[#allocation7] ss:$0 sm:$0xff]  ;;  %v236_v51 = vld [vmem:[#allocation10 + $0x8] sm:$0xff]  ;;  %v235_v52 = vld [vmem:[#allocation10] sm:$0xff] }
  0x2c   :  { %219 = vmatpush.msra.mxu2 %v204_v18  ;;  %v238_v49 = vld [vmem:[#allocation10 + $0x18] sm:$0xff]  ;;  %v406_v12 = vld [vmem:[#allocation11] ss:$0 sm:$0xff] }
  0x2d   :  { %258 = vmatpush.msra.mxu3 %v238_v49  ;;  %v404_v53 = vld [vmem:[%s880_s10] ss:$0 sm:$0xff]  ;;  %v405_v59 = vld [vmem:[#allocation8] ss:$0 sm:$0xff] }
  0x2e   :  { %220 = vmatpush.msra.mxu2 %v203_v19 }
  0x2f   :  { %286 = vmatpush.xpose.msra.mxu0 %v277_v20  ;;  %259 = vmatpush.msra.mxu3 %v237_v50 }
  0x30   :  { %221 = vmatpush.msra.mxu2 %v202_v21 }
  0x31   :  { %260 = vmatpush.msra.mxu3 %v236_v51 }
  0x32   :  { %222 = vmatpush.msra.mxu2 %v201_v22 }
  0x33   :  { %287 = vmatpush.xpose.msra.mxu0 %v276_v23  ;;  %261 = vmatpush.msra.mxu3 %v235_v52 }
  0x34   :  { %223 = vmatpush.msra.mxu2 %v200_v24 }
  0x36   :  { %224 = vmatpush.msra.mxu2 %v199_v25 }
  0x37   :  { %288 = vmatpush.xpose.msra.mxu0 %v275_v26 }
  0x38   :  { %225 = vmatpush.msra.mxu2 %v198_v27 }
  0x3a   :  { %226 = vmatpush.msra.mxu2 %v197_v29 }
  0x3b   :  { %289 = vmatpush.xpose.msra.mxu0 %v274_v30 }
  0x3c   :  { %227 = vmatpush.msra.mxu2 %v196_v31 }
  0x3e   :  { %228 = vmatpush.msra.mxu2 %v195_v42 }
  0x3f   :  { %290 = vmatpush.xpose.msra.mxu0 %v273_v35 }
  0x40   :  { %229 = vmatpush.msra.mxu2 %v194_v44 }
  0x43   :  { %291 = vmatpush.xpose.msra.mxu0 %v272_v36 }
  0x47   :  { %292 = vmatpush.xpose.msra.mxu0 %v271_v37 }
  0x4b   :  { %293 = vmatpush.xpose.msra.mxu0 %v270_v38 }
  0x4f   :  { %294 = vmatpush.xpose.msra.mxu0 %v269_v39 }
  0x53   :  { %295 = vmatpush.xpose.msra.mxu0 %v268_v40 }
  0x57   :  { %296 = vmatpush.xpose.msra.mxu0 %v267_v41 }
  0x5b   :  { %297 = vmatpush.xpose.msra.mxu0 %v266_v43 }
  0xa1   :  { %v159_v32 = vpop.f32.mrf.mxu1 }
  0xa2   :  { %v160_v33 = vadd.f32 %v402_v28, %v159_v32 }
  0xa4   :  { %v162_v34 = vmax.f32 %v160_v33, 0.0 }
  0xa6   :  { %389 = vmatmul.msk.f32.vlgmr.msrb.gmra.mxu1 %vm138_vm0, %v162_v34 }
 0x123   :  { %v191_v46 = vpop.f32.mrf.mxu1 }
 0x124   :  { %v192_v47 = vadd.f32 %v403_v45, %v191_v46 }
 0x126   :  { %334 = vst [vmem:[#allocation13] sm:$0xff] %v192_v47  ;;  %230 = vmatmul.f32.vlgmr.msra.gmra.mxu2 %v192_v47  ;;  %298 = vmatmul.f32.vlgmr.msra.gmra.mxu0 %v192_v47  ;;  %v302_v48 = vmul.f32 %v192_v47, %v192_v47 }
 0x127   :  { %347 = dma.vmem_to_hbm [thread:$0]  %s343_s3, 128, %s345_s7, [#allocation4]  }
 0x128   :  { %303 = vadd.xlane.f32.xlu0 %v302_v48 }
 0x19b   :  { %v304_v54 = vpop.xlane.xlu0 %303 }
 0x19c   :  { %v309_v56 = vadd.f32 %v404_v53, %v304_v54 }
 0x1a3   :  { %v299_v55 = vpop.f32.mrf.mxu0 }
 0x1a4   :  { %v310_v57 = vmul.f32 2.0, %v299_v55 }
 0x1a6   :  { %v311_v58 = vsub.f32 %v309_v56, %v310_v57 }
 0x1a8   :  { %v312_v60 = vmax.f32 %v311_v58, 0.0 }
 0x1a9   :  { %v231_v61 = vpop.f32.mrf.mxu2 }
 0x1aa   :  { %v313_v62 = vadd.f32 1.0, %v312_v60  ;;  %v232_v63 = vadd.f32 %v405_v59, %v231_v61 }
 0x1ac   :  { %407 = vrcp.f32 %v313_v62  ;;  %v234_v0 = vmax.f32 %v232_v63, 0.0  ;;  %v325_v4 = vand.u32 2147483648, %v313_v62  ;;  %v323_v6 = vand.u32 2147483647, %v313_v62 }
 0x1ad   :  { %vm319_vm2 = vweird.f32 %v313_v62 }
 0x1ae   :  { %390 = vmatmul.msk.f32.vlgmr.msra.gmra.mxu3 %vm138_vm0, %v234_v0  ;;  %v326_v8 = vor.u32 1.1754944e-38, %v325_v4  ;;  %vm324_vm4 = vcmp.eq.f32.partialorder %v323_v6, 8.507059e+37 }
 0x1b2   :  { %v408_v1 = vpop.eup %407 }
 0x1b3   :  { %v315_v2 = vmul.f32 %v408_v1, %v313_v62  ;;  %vm320_vm1 = vweird.f32 %v408_v1 }
 0x1b4   :  { %vm321_vm3 = vmor %vm319_vm2, %vm320_vm1 }
 0x1b5   :  { %v316_v3 = vsub.f32 1.0, %v315_v2 }
 0x1b7   :  { %v317_v5 = vmul.f32 %v408_v1, %v316_v3 }
 0x1b9   :  { %v318_v7 = vadd.f32 %v408_v1, %v317_v5 }
 0x1bb   :  { %v322_v9 = vsel %vm321_vm3, %v408_v1, %v318_v7 }
 0x1bc   :  { %v327_v10 = vsel %vm324_vm4, %v326_v8, %v322_v9 }
 0x1bd   :  { %v329_v11 = vmul.f32 %v327_v10, %v327_v10 }
 0x1bf   :  { %330 = vadd.xlane.f32.xlu0 %v329_v11 }
 0x231   :  { %v263_v13 = vpop.f32.mrf.mxu3 }
 0x232   :  { %v264_v14 = vadd.f32 %v406_v12, %v263_v13  ;;  %v331_v15 = vpop.xlane.xlu0 %330 }
 0x233   :  { %409 = vrcp.f32 %v331_v15 }
 0x234   :  { %336 = vst [vmem:[#allocation16] sm:$0xff] %v264_v14 }
 0x239   :  { %v410_v16 = vpop.eup %409 }
 0x23a   :  { %v333_v17 = vmul.f32 %v410_v16, %v329_v11 }
 0x23c   :  { %335 = vst [vmem:[#allocation14] sm:$0xff] %v333_v17 }
 0x23d   :  { %358 = dma.vmem_to_hbm [thread:$0]  %s354_s16, 128, %s356_s23, [#allocation15]  }
 0x23e   :  { %369 = dma.vmem_to_hbm [thread:$0]  %s365_s11, 128, %s367_s26, [#allocation15]  }
 0x23f   :  { %635 = dma.done.wait [#allocation4], 128  }
 0x240   :  { %636 = vsyncadd [#allocation4], 4294967168 }
 0x241   :  { %637 = dma.done.wait [#allocation15], 256  }
 0x242   :  { %638 = vsyncadd [#allocation15], 4294967040 }
 0x243   :  { %382 = vsyncpa [#allocation3], 1 }
 0x244   :  { %383 = vsyncpa [#allocation6], 1 }
 0x245   :  { %384 = vsyncpa [#allocation9], 1 }
 0x246   :  { %385 = vsyncpa [#allocation12], 1 }
 0x247   :  { %386 = vsyncpa [#allocation4], 1 }
 0x248   :  { %387 = vsyncpa [#allocation15], 1 }

</bundles_post_ra>
